<compile_context>
chip_gen: v5e
topology: v5e:2x2
jax: 0.10.0
libtpu: 0.0.40
codegen_flags: <defaults>
</compile_context>

<pallas_src>
import functools

import jax
import jax.numpy as jnp
from jax import lax
from jax.experimental import pallas as pl
from jax.experimental.pallas import tpu as pltpu

LANE = 128          # lane width
SUB = 8             # f32 sublane tile height (accumulator vreg shape)
MAX_TM = 2048       # max tile rows: 2048x128 f32 = 1 MiB per input block


def _reduce2d(x, op):
    # Full 2D reduction kept as a (1, 1) array (TPU-friendly keepdims reductions).
    return op(op(x, axis=1, keepdims=True), axis=0, keepdims=True)


def _fold_to_vreg(x, op):
    # Fold a (TM, LANE) tile into an (8, 128) partial with pure VPU elementwise
    # ops (reshape matches the native (8,128) tile decomposition; no XLU work).
    tm = x.shape[0]
    return op(x.reshape(tm // SUB, SUB, LANE), axis=0)


def _pick_tm(rows, gran, max_rows=MAX_TM):
    """Largest multiple of `gran` that divides `rows` and is <= max_rows."""
    tm = min(max_rows, rows)
    tm -= tm % gran
    tm = max(tm, gran)
    while rows % tm:
        tm -= gran
    return tm


def _vmem_capacity_bytes():
    """Per-core VMEM capacity; conservative v7x fallback if query fails."""
    try:
        info = pltpu.get_tpu_info()
        for name in ("vmem_capacity_bytes", "vmem_size_bytes", "vmem_bytes"):
            v = getattr(info, name, None)
            if v:
                return int(v)
    except Exception:
        pass
    return 64 << 20


# ----------------------------------------------------------------------------
# Single-call, two-phase, VMEM-resident path (each tensor read from HBM once).
# ----------------------------------------------------------------------------
def _resident_kernel(p_ref, l_ref, out_ref,
                     p_buf, l_buf, s1_acc, s2_acc,
                     pmin_acc, pmax_acc, lmin_acc, lmax_acc,
                     *, w0, w1, size, l_coef, tm, n_tiles, gran):
    i = pl.program_id(0)

    p_raw = p_ref[...]
    t_raw = l_ref[...]
    p = p_raw.astype(jnp.float32)
    t = t_raw.astype(jnp.float32)

    @pl.when(i == 0)
    def _():
        s1_acc[...] = jnp.zeros_like(s1_acc)
        s2_acc[...] = jnp.zeros_like(s2_acc)
        pmin_acc[...] = jnp.full_like(pmin_acc, jnp.inf)
        pmax_acc[...] = jnp.full_like(pmax_acc, -jnp.inf)
        lmin_acc[...] = jnp.full_like(lmin_acc, jnp.inf)
        lmax_acc[...] = jnp.full_like(lmax_acc, -jnp.inf)

    # Phase 0: stash the raw tile into persistent VMEM (original dtype).
    off = pl.multiple_of(i * tm, gran)
    p_buf[pl.ds(off, tm), :] = p_raw
    l_buf[pl.ds(off, tm), :] = t_raw

    # Unweighted CE partial sums (w0/w1 applied once at finalize) + min/max.
    s1_acc[...] += _fold_to_vreg(t * jnp.log(p), jnp.sum)
    s2_acc[...] += _fold_to_vreg((1.0 - t) * jnp.log(1.0 - p), jnp.sum)
    pmin_acc[...] = jnp.minimum(pmin_acc[...], _fold_to_vreg(p, jnp.min))
    pmax_acc[...] = jnp.maximum(pmax_acc[...], _fold_to_vreg(p, jnp.max))
    lmin_acc[...] = jnp.minimum(lmin_acc[...], _fold_to_vreg(t, jnp.min))
    lmax_acc[...] = jnp.maximum(lmax_acc[...], _fold_to_vreg(t, jnp.max))

    @pl.when(i == n_tiles - 1)
    def _():
        # Finalize statistics: one cross-lane reduce per stat, exact divides
        # (done once, off the per-element path).
        p_min = _reduce2d(pmin_acc[...], jnp.min)                       # (1,1)
        inv_pr = 1.0 / (_reduce2d(pmax_acc[...], jnp.max) - p_min)
        l_min = _reduce2d(lmin_acc[...], jnp.min)
        inv_tr = 1.0 / (_reduce2d(lmax_acc[...], jnp.max) - l_min)
        ce = (w1 * _reduce2d(s1_acc[...], jnp.sum)
              + w0 * _reduce2d(s2_acc[...], jnp.sum))

        # Phase 1: Jaccard sum over the VMEM-resident copies (no HBM traffic).
        def body(k, acc):
            o = pl.multiple_of(k * tm, gran)
            pk = p_buf[pl.ds(o, tm), :].astype(jnp.float32)
            tk = l_buf[pl.ds(o, tm), :].astype(jnp.float32)
            pn = (pk - p_min) * inv_pr
            tn = (tk - l_min) * inv_tr
            prod = pn * tn
            jac = prod * pl.reciprocal(pn + tn - prod + 1e-10, approx=True)
            return acc + _fold_to_vreg(jac, jnp.sum)

        jac_acc = lax.fori_loop(0, n_tiles, body,
                                jnp.zeros((SUB, LANE), jnp.float32))

        H = -(ce / size)
        J = _reduce2d(jac_acc, jnp.sum) / size
        out_ref[...] = H - l_coef * jnp.log(J + 1e-10)


# ----------------------------------------------------------------------------
# Two-pass streaming path (for tensors too large to keep resident in VMEM).
# ----------------------------------------------------------------------------
def _stats_kernel(p_ref, l_ref,
                  s1_ref, s2_ref, pmin_ref, pmax_ref, lmin_ref, lmax_ref):
    i = pl.program_id(1)   # accumulation axis (axis 0 is the per-core split)
    p = p_ref[...].astype(jnp.float32)
    t = l_ref[...].astype(jnp.float32)

    # (8,128) vreg-shaped partials — VPU only, no cross-lane reductions here.
    s1 = _fold_to_vreg(t * jnp.log(p), jnp.sum)
    s2 = _fold_to_vreg((1.0 - t) * jnp.log(1.0 - p), jnp.sum)
    p_mn = _fold_to_vreg(p, jnp.min)
    p_mx = _fold_to_vreg(p, jnp.max)
    t_mn = _fold_to_vreg(t, jnp.min)
    t_mx = _fold_to_vreg(t, jnp.max)

    @pl.when(i == 0)
    def _():
        s1_ref[...] = jnp.zeros_like(s1_ref)
        s2_ref[...] = jnp.zeros_like(s2_ref)
        pmin_ref[...] = jnp.full_like(pmin_ref, jnp.inf)
        pmax_ref[...] = jnp.full_like(pmax_ref, -jnp.inf)
        lmin_ref[...] = jnp.full_like(lmin_ref, jnp.inf)
        lmax_ref[...] = jnp.full_like(lmax_ref, -jnp.inf)

    s1_ref[...] += s1
    s2_ref[...] += s2
    pmin_ref[...] = jnp.minimum(pmin_ref[...], p_mn)
    pmax_ref[...] = jnp.maximum(pmax_ref[...], p_mx)
    lmin_ref[...] = jnp.minimum(lmin_ref[...], t_mn)
    lmax_ref[...] = jnp.maximum(lmax_ref[...], t_mx)


def _jaccard_kernel(pmin_ref, pmax_ref, lmin_ref, lmax_ref, p_ref, l_ref,
                    jac_ref):
    i = pl.program_id(1)

    # Pass-1 partials are tiny (nsplit*8,128) blocks that stay resident in
    # VMEM (block index never changes -> no re-DMA); reducing them here is a
    # handful of XLU ops hidden under the per-tile VPU work, and it removes
    # every host-side XLA op between pass 1 and pass 2.
    p_min = _reduce2d(pmin_ref[...], jnp.min)                           # (1,1)
    inv_pr = 1.0 / (_reduce2d(pmax_ref[...], jnp.max) - p_min)
    l_min = _reduce2d(lmin_ref[...], jnp.min)
    inv_tr = 1.0 / (_reduce2d(lmax_ref[...], jnp.max) - l_min)

    p = p_ref[...].astype(jnp.float32)
    t = l_ref[...].astype(jnp.float32)
    pn = (p - p_min) * inv_pr
    tn = (t - l_min) * inv_tr
    prod = pn * tn
    jac = prod * pl.reciprocal(pn + tn - prod + 1e-10, approx=True)

    @pl.when(i == 0)
    def _():
        jac_ref[...] = jnp.zeros_like(jac_ref)

    jac_ref[...] += _fold_to_vreg(jac, jnp.sum)


# ----------------------------------------------------------------------------
# Wrapper
# ----------------------------------------------------------------------------
def ternaus_loss(preds, labels, l=1.0, beta=1.0, reorder=False,
                 force_two_pass=False):
    if reorder:
        labels = jnp.transpose(labels, (0, 3, 1, 2))  # NHWC -> NCHW
    assert preds.shape == labels.shape
    total = preds.size
    size = float(total)

    # Stream bf16/f32 directly (cast per-tile inside the kernels); anything
    # else is cast to f32 once in the wrapper.
    if preds.dtype == labels.dtype and preds.dtype in (jnp.float32, jnp.bfloat16):
        dtype = preds.dtype
        p2, l2 = preds, labels
    else:
        dtype = jnp.float32
        p2, l2 = preds.astype(jnp.float32), labels.astype(jnp.float32)

    itemsize = jnp.dtype(dtype).itemsize
    gran = 16 if itemsize == 2 else 8     # sublane tiling granularity

    # TODO(synk): general element counts need a masked tail tile (zero-padding
    # would corrupt the global min/max and the log terms); require divisibility.
    assert total % (gran * LANE) == 0, (
        f"element count must be divisible by {gran * LANE} for dtype {dtype}")
    R = total // LANE
    p2 = p2.reshape(R, LANE)
    l2 = l2.reshape(R, LANE)

    # weights = [beta, 1] / ||[beta, 1]||
    norm = (beta * beta + 1.0) ** 0.5
    w0 = float(beta) / norm
    w1 = 1.0 / norm
    l_coef = float(l)

    vmem_cap = _vmem_capacity_bytes()

    # ------------- single-call VMEM-resident path (generation-aware cap) -----
    tm_res = _pick_tm(R, gran)
    n_tiles = R // tm_res
    resident_bytes = 2 * R * LANE * itemsize            # both tensors, raw dtype
    stream_bytes = 2 * 2 * tm_res * LANE * itemsize     # 2 inputs x 2 buffers
    temp_bytes = 10 * tm_res * LANE * 4                 # f32 elementwise temps (generous)
    accum_bytes = 6 * SUB * LANE * 4
    need = resident_bytes + stream_bytes + temp_bytes + accum_bytes + (2 << 20)

    if (not force_two_pass) and need <= int(vmem_cap * 0.8):
        vmem_limit = int(min(vmem_cap * 0.85, max(need + (8 << 20), 32 << 20)))
        out = pl.pallas_call(
            functools.partial(_resident_kernel, w0=w0, w1=w1, size=size,
                              l_coef=l_coef, tm=tm_res, n_tiles=n_tiles,
                              gran=gran),
            out_shape=jax.ShapeDtypeStruct((1, 1), jnp.float32),
            grid=(n_tiles,),
            in_specs=[pl.BlockSpec((tm_res, LANE), lambda i: (i, 0)),
                      pl.BlockSpec((tm_res, LANE), lambda i: (i, 0))],
            out_specs=pl.BlockSpec((1, 1), lambda i: (0, 0)),
            scratch_shapes=[pltpu.VMEM((R, LANE), dtype),
                            pltpu.VMEM((R, LANE), dtype)]
                           + [pltpu.VMEM((SUB, LANE), jnp.float32)] * 6,
            compiler_params=pltpu.CompilerParams(
                dimension_semantics=("arbitrary",),
                vmem_limit_bytes=vmem_limit),
        )(p2, l2)
        return out[0, 0]

    # ------------- two-pass streaming path ------------------------------------
    # Leading "parallel" axis of size 2 gives the v7x megacore per-core partial
    # accumulators; harmless on single-core chips.
    # TODO(synk): on v7x, verify in a trace that this axis really shards across
    # the two TensorCores; switch to pltpu.CORE_PARALLEL if it does not.
    nsplit = 2 if (R % (2 * gran) == 0 and R >= 2 * gran) else 1
    rows_per_split = R // nsplit
    tm = _pick_tm(rows_per_split, gran)
    tiles_per_split = rows_per_split // tm

    tile_spec = pl.BlockSpec(
        (tm, LANE), lambda c, i, _tps=tiles_per_split: (c * _tps + i, 0))
    part_spec = pl.BlockSpec((SUB, LANE), lambda c, i: (c, 0))
    full_part_spec = pl.BlockSpec((nsplit * SUB, LANE), lambda c, i: (0, 0))
    part_shape = jax.ShapeDtypeStruct((nsplit * SUB, LANE), jnp.float32)
    two_pass_params = pltpu.CompilerParams(
        dimension_semantics=("parallel", "arbitrary"),
        vmem_limit_bytes=int(min(vmem_cap // 2, 64 << 20)))

    # Pass 1: unweighted CE partial sums (S1, S2) + min/max partials.
    s1_p, s2_p, pmin_p, pmax_p, lmin_p, lmax_p = pl.pallas_call(
        _stats_kernel,
        out_shape=(part_shape,) * 6,
        grid=(nsplit, tiles_per_split),
        in_specs=[tile_spec, tile_spec],
        out_specs=(part_spec,) * 6,
        compiler_params=two_pass_params,
    )(p2, l2)

    # Pass 2: normalized Jaccard partial sums; the four stats are derived
    # in-kernel from pass-1's partial blocks (no XLA ops in between).
    jac_p = pl.pallas_call(
        _jaccard_kernel,
        out_shape=part_shape,
        grid=(nsplit, tiles_per_split),
        in_specs=[full_part_spec] * 4 + [tile_spec, tile_spec],
        out_specs=part_spec,
        compiler_params=two_pass_params,
    )(pmin_p, pmax_p, lmin_p, lmax_p, p2, l2)

    # Final combine (tiny XLA ops, after pass 2 — off the inter-pass path).
    H = -(w1 * jnp.sum(s1_p) + w0 * jnp.sum(s2_p)) / size
    J = jnp.sum(jac_p) / size
    return H - l_coef * jnp.log(J + 1e-10)


def ternaus_loss_ref(preds, labels, l=1.0, beta=1.0):
    """Pure-JAX reference mirroring the PyTorch code (for validation)."""
    p = preds.astype(jnp.float32)
    t = labels.astype(jnp.float32)
    size = p.size
    w = jnp.array([beta, 1.0], jnp.float32)
    w = w / jnp.linalg.norm(w)
    ce = w[1] * (t * jnp.log(p)) + w[0] * ((1.0 - t) * jnp.log(1.0 - p))
    H = -(1.0 / size) * jnp.sum(ce)
    pn = (p - p.min()) / (p.max() - p.min())
    tn = (t - t.min()) / (t.max() - t.min())
    J = (1.0 / size) * jnp.sum(pn * tn / (pn + tn - tn * pn + 1e-10))
    return H - l * jnp.log(J + 1e-10)


if __name__ == "__main__":
    loss_fn = jax.jit(
        ternaus_loss,
        static_argnames=("l", "beta", "reorder", "force_two_pass"))

    key = jax.random.PRNGKey(0)
    k1, k2, k3, k4, k5, k6 = jax.random.split(key, 6)

    # 1) Small NCHW f32 input — VMEM-resident single-call path.
    shape_s = (2, 4, 16, 16)
    preds_s = jax.random.uniform(k1, shape_s, jnp.float32, minval=0.05, maxval=0.95)
    labels_s = jax.random.uniform(k2, shape_s, jnp.float32, minval=0.05, maxval=0.95)
    ref_s = ternaus_loss_ref(preds_s, labels_s, 1.0, 1.0)
    out_res = jax.block_until_ready(loss_fn(preds_s, labels_s, l=1.0, beta=1.0))
    assert jnp.allclose(out_res, ref_s, rtol=2e-3, atol=2e-3), (out_res, ref_s)

    # 2) Same input forced through the two-pass streaming path.
    out_2p = jax.block_until_ready(
        loss_fn(preds_s, labels_s, l=1.0, beta=1.0, force_two_pass=True))
    assert jnp.allclose(out_2p, ref_s, rtol=2e-3, atol=2e-3), (out_2p, ref_s)

    # 3) Medium f32 input, l/beta != 1, forced two-pass (multi-tile, 2-way split).
    shape_m = (2, 8, 128, 128)
    preds_m = jax.random.uniform(k3, shape_m, jnp.float32, minval=0.05, maxval=0.95)
    labels_m = jax.random.uniform(k4, shape_m, jnp.float32, minval=0.05, maxval=0.95)
    ref_m = ternaus_loss_ref(preds_m, labels_m, 2.0, 0.5)
    out_m = jax.block_until_ready(
        loss_fn(preds_m, labels_m, l=2.0, beta=0.5, force_two_pass=True))
    assert jnp.allclose(out_m, ref_m, rtol=2e-3, atol=2e-3), (out_m, ref_m)

    # 4) Larger f32 input — resident path with multiple streamed tiles.
    shape_l = (4, 8, 128, 128)
    preds_l = jax.random.uniform(k5, shape_l, jnp.float32, minval=0.05, maxval=0.95)
    labels_l = jax.random.uniform(k6, shape_l, jnp.float32, minval=0.05, maxval=0.95)
    ref_l = ternaus_loss_ref(preds_l, labels_l, 1.5, 2.0)
    out_l = jax.block_until_ready(loss_fn(preds_l, labels_l, l=1.5, beta=2.0))
    assert jnp.allclose(out_l, ref_l, rtol=2e-3, atol=2e-3), (out_l, ref_l)

    # 5) bf16 inputs streamed directly (cast per-tile): resident + two-pass.
    preds_b = preds_s.astype(jnp.bfloat16)
    labels_b = labels_s.astype(jnp.bfloat16)
    ref_b = ternaus_loss_ref(preds_b, labels_b, 1.0, 1.0)
    out_b = jax.block_until_ready(loss_fn(preds_b, labels_b, l=1.0, beta=1.0))
    assert jnp.allclose(out_b, ref_b, rtol=4e-3, atol=4e-3), (out_b, ref_b)

    preds_mb = preds_m.astype(jnp.bfloat16)
    labels_mb = labels_m.astype(jnp.bfloat16)
    ref_mb = ternaus_loss_ref(preds_mb, labels_mb, 2.0, 0.5)
    out_mb = jax.block_until_ready(
        loss_fn(preds_mb, labels_mb, l=2.0, beta=0.5, force_two_pass=True))
    assert jnp.allclose(out_mb, ref_mb, rtol=4e-3, atol=4e-3), (out_mb, ref_mb)

    print("KERNEL_OK")
</pallas_src>

<mosaic_0001>
module attributes {stable_mosaic.version = 11 : i64} {
  func.func @_resident_kernel(%arg0: i32, %arg1: memref<16x128xf32, #tpu.memory_space<vmem>>, %arg2: memref<16x128xf32, #tpu.memory_space<vmem>>, %arg3: memref<1x1xf32, #tpu.memory_space<vmem>>, %arg4: memref<16x128xf32, #tpu.memory_space<vmem>>, %arg5: memref<16x128xf32, #tpu.memory_space<vmem>>, %arg6: memref<8x128xf32, #tpu.memory_space<vmem>>, %arg7: memref<8x128xf32, #tpu.memory_space<vmem>>, %arg8: memref<8x128xf32, #tpu.memory_space<vmem>>, %arg9: memref<8x128xf32, #tpu.memory_space<vmem>>, %arg10: memref<8x128xf32, #tpu.memory_space<vmem>>, %arg11: memref<8x128xf32, #tpu.memory_space<vmem>>) attributes {dimension_semantics = [#tpu.dimension_semantics<arbitrary>], iteration_bounds = array<i64: 1>, scalar_prefetch = 0 : i64, scratch_operands = 8 : i64, tpu.core_type = #tpu.core_type<tc>, window_params = [{transform_indices = @transform_0, window_bounds = array<i64: 16, 128>}, {transform_indices = @transform_1, window_bounds = array<i64: 16, 128>}, {pipeline_mode = #tpu.pipeline_mode<synchronous>, transform_indices = @transform_2, window_bounds = array<i64: 1, 1>}]} {
    %c0 = arith.constant 0 : index
    %c0_0 = arith.constant 0 : index
    %0 = vector.load %arg1[%c0, %c0_0] : memref<16x128xf32, #tpu.memory_space<vmem>>, vector<16x128xf32>
    %c0_1 = arith.constant 0 : index
    %c0_2 = arith.constant 0 : index
    %1 = vector.load %arg2[%c0_1, %c0_2] : memref<16x128xf32, #tpu.memory_space<vmem>>, vector<16x128xf32>
    %c0_i32 = arith.constant 0 : i32
    %2 = arith.cmpi eq, %arg0, %c0_i32 : i32
    %3 = arith.extui %2 : i1 to i32
    %c0_i32_3 = arith.constant 0 : i32
    %4 = arith.cmpi ne, %3, %c0_i32_3 : i32
    scf.if %4 {
      %cst_39 = arith.constant 0.000000e+00 : f32
      %52 = vector.broadcast %cst_39 : f32 to vector<8x128xf32>
      %c0_40 = arith.constant 0 : index
      %c0_41 = arith.constant 0 : index
      %53 = vector.load %arg6[%c0_40, %c0_41] : memref<8x128xf32, #tpu.memory_space<vmem>>, vector<8x128xf32>
      tpu.vector_store %arg6[%c0_40, %c0_41], %52 {strides = array<i32>} : memref<8x128xf32, #tpu.memory_space<vmem>>, vector<8x128xf32>,
      %cst_42 = arith.constant 0.000000e+00 : f32
      %54 = vector.broadcast %cst_42 : f32 to vector<8x128xf32>
      %c0_43 = arith.constant 0 : index
      %c0_44 = arith.constant 0 : index
      %55 = vector.load %arg7[%c0_43, %c0_44] : memref<8x128xf32, #tpu.memory_space<vmem>>, vector<8x128xf32>
      tpu.vector_store %arg7[%c0_43, %c0_44], %54 {strides = array<i32>} : memref<8x128xf32, #tpu.memory_space<vmem>>, vector<8x128xf32>,
      %cst_45 = arith.constant 0x7F800000 : f32
      %56 = vector.broadcast %cst_45 : f32 to vector<8x128xf32>
      %c0_46 = arith.constant 0 : index
      %c0_47 = arith.constant 0 : index
      %57 = vector.load %arg8[%c0_46, %c0_47] : memref<8x128xf32, #tpu.memory_space<vmem>>, vector<8x128xf32>
      tpu.vector_store %arg8[%c0_46, %c0_47], %56 {strides = array<i32>} : memref<8x128xf32, #tpu.memory_space<vmem>>, vector<8x128xf32>,
      %cst_48 = arith.constant 0xFF800000 : f32
      %58 = vector.broadcast %cst_48 : f32 to vector<8x128xf32>
      %c0_49 = arith.constant 0 : index
      %c0_50 = arith.constant 0 : index
      %59 = vector.load %arg9[%c0_49, %c0_50] : memref<8x128xf32, #tpu.memory_space<vmem>>, vector<8x128xf32>
      tpu.vector_store %arg9[%c0_49, %c0_50], %58 {strides = array<i32>} : memref<8x128xf32, #tpu.memory_space<vmem>>, vector<8x128xf32>,
      %cst_51 = arith.constant 0x7F800000 : f32
      %60 = vector.broadcast %cst_51 : f32 to vector<8x128xf32>
      %c0_52 = arith.constant 0 : index
      %c0_53 = arith.constant 0 : index
      %61 = vector.load %arg10[%c0_52, %c0_53] : memref<8x128xf32, #tpu.memory_space<vmem>>, vector<8x128xf32>
      tpu.vector_store %arg10[%c0_52, %c0_53], %60 {strides = array<i32>} : memref<8x128xf32, #tpu.memory_space<vmem>>, vector<8x128xf32>,
      %cst_54 = arith.constant 0xFF800000 : f32
      %62 = vector.broadcast %cst_54 : f32 to vector<8x128xf32>
      %c0_55 = arith.constant 0 : index
      %c0_56 = arith.constant 0 : index
      %63 = vector.load %arg11[%c0_55, %c0_56] : memref<8x128xf32, #tpu.memory_space<vmem>>, vector<8x128xf32>
      tpu.vector_store %arg11[%c0_55, %c0_56], %62 {strides = array<i32>} : memref<8x128xf32, #tpu.memory_space<vmem>>, vector<8x128xf32>,
    } else {
    }
    %c16_i32 = arith.constant 16 : i32
    %5 = arith.muli %arg0, %c16_i32 : i32
    %6 = tpu.assume_multiple %5, 8 : i32
    %7 = arith.index_cast %6 : i32 to index
    %c0_4 = arith.constant 0 : index
    %8 = vector.load %arg4[%7, %c0_4] : memref<16x128xf32, #tpu.memory_space<vmem>>, vector<16x128xf32>
    tpu.vector_store %arg4[%7, %c0_4], %0 {strides = array<i32>} : memref<16x128xf32, #tpu.memory_space<vmem>>, vector<16x128xf32>,
    %9 = arith.index_cast %6 : i32 to index
    %c0_5 = arith.constant 0 : index
    %10 = vector.load %arg5[%9, %c0_5] : memref<16x128xf32, #tpu.memory_space<vmem>>, vector<16x128xf32>
    tpu.vector_store %arg5[%9, %c0_5], %1 {strides = array<i32>} : memref<16x128xf32, #tpu.memory_space<vmem>>, vector<16x128xf32>,
    %c0_6 = arith.constant 0 : index
    %c0_7 = arith.constant 0 : index
    %11 = vector.load %arg6[%c0_6, %c0_7] : memref<8x128xf32, #tpu.memory_space<vmem>>, vector<8x128xf32>
    %12 = math.log %0 : vector<16x128xf32>
    %13 = arith.mulf %1, %12 : vector<16x128xf32>
    %14 = vector.shape_cast %13 : vector<16x128xf32> to vector<2x8x128xf32>
    %cst = arith.constant dense<0.000000e+00> : vector<8x128xf32>
    %15 = vector.multi_reduction <add>, %14, %cst [0] : vector<2x8x128xf32> to vector<8x128xf32>
    %16 = arith.addf %11, %15 : vector<8x128xf32>
    %c0_8 = arith.constant 0 : index
    %c0_9 = arith.constant 0 : index
    %17 = vector.load %arg6[%c0_8, %c0_9] : memref<8x128xf32, #tpu.memory_space<vmem>>, vector<8x128xf32>
    tpu.vector_store %arg6[%c0_8, %c0_9], %16 {strides = array<i32>} : memref<8x128xf32, #tpu.memory_space<vmem>>, vector<8x128xf32>,
    %c0_10 = arith.constant 0 : index
    %c0_11 = arith.constant 0 : index
    %18 = vector.load %arg7[%c0_10, %c0_11] : memref<8x128xf32, #tpu.memory_space<vmem>>, vector<8x128xf32>
    %cst_12 = arith.constant 1.000000e+00 : f32
    %19 = vector.broadcast %cst_12 : f32 to vector<16x128xf32>
    %20 = arith.subf %19, %1 : vector<16x128xf32>
    %cst_13 = arith.constant 1.000000e+00 : f32
    %21 = vector.broadcast %cst_13 : f32 to vector<16x128xf32>
    %22 = arith.subf %21, %0 : vector<16x128xf32>
    %23 = math.log %22 : vector<16x128xf32>
    %24 = arith.mulf %20, %23 : vector<16x128xf32>
    %25 = vector.shape_cast %24 : vector<16x128xf32> to vector<2x8x128xf32>
    %cst_14 = arith.constant dense<0.000000e+00> : vector<8x128xf32>
    %26 = vector.multi_reduction <add>, %25, %cst_14 [0] : vector<2x8x128xf32> to vector<8x128xf32>
    %27 = arith.addf %18, %26 : vector<8x128xf32>
    %c0_15 = arith.constant 0 : index
    %c0_16 = arith.constant 0 : index
    %28 = vector.load %arg7[%c0_15, %c0_16] : memref<8x128xf32, #tpu.memory_space<vmem>>, vector<8x128xf32>
    tpu.vector_store %arg7[%c0_15, %c0_16], %27 {strides = array<i32>} : memref<8x128xf32, #tpu.memory_space<vmem>>, vector<8x128xf32>,
    %c0_17 = arith.constant 0 : index
    %c0_18 = arith.constant 0 : index
    %29 = vector.load %arg8[%c0_17, %c0_18] : memref<8x128xf32, #tpu.memory_space<vmem>>, vector<8x128xf32>
    %30 = vector.shape_cast %0 : vector<16x128xf32> to vector<2x8x128xf32>
    %cst_19 = arith.constant dense<0x7F800000> : vector<8x128xf32>
    %31 = vector.multi_reduction <minimumf>, %30, %cst_19 [0] : vector<2x8x128xf32> to vector<8x128xf32>
    %32 = arith.minimumf %29, %31 : vector<8x128xf32>
    %c0_20 = arith.constant 0 : index
    %c0_21 = arith.constant 0 : index
    %33 = vector.load %arg8[%c0_20, %c0_21] : memref<8x128xf32, #tpu.memory_space<vmem>>, vector<8x128xf32>
    tpu.vector_store %arg8[%c0_20, %c0_21], %32 {strides = array<i32>} : memref<8x128xf32, #tpu.memory_space<vmem>>, vector<8x128xf32>,
    %c0_22 = arith.constant 0 : index
    %c0_23 = arith.constant 0 : index
    %34 = vector.load %arg9[%c0_22, %c0_23] : memref<8x128xf32, #tpu.memory_space<vmem>>, vector<8x128xf32>
    %35 = vector.shape_cast %0 : vector<16x128xf32> to vector<2x8x128xf32>
    %cst_24 = arith.constant dense<0xFF800000> : vector<8x128xf32>
    %36 = vector.multi_reduction <maximumf>, %35, %cst_24 [0] : vector<2x8x128xf32> to vector<8x128xf32>
    %37 = arith.maximumf %34, %36 : vector<8x128xf32>
    %c0_25 = arith.constant 0 : index
    %c0_26 = arith.constant 0 : index
    %38 = vector.load %arg9[%c0_25, %c0_26] : memref<8x128xf32, #tpu.memory_space<vmem>>, vector<8x128xf32>
    tpu.vector_store %arg9[%c0_25, %c0_26], %37 {strides = array<i32>} : memref<8x128xf32, #tpu.memory_space<vmem>>, vector<8x128xf32>,
    %c0_27 = arith.constant 0 : index
    %c0_28 = arith.constant 0 : index
    %39 = vector.load %arg10[%c0_27, %c0_28] : memref<8x128xf32, #tpu.memory_space<vmem>>, vector<8x128xf32>
    %40 = vector.shape_cast %1 : vector<16x128xf32> to vector<2x8x128xf32>
    %cst_29 = arith.constant dense<0x7F800000> : vector<8x128xf32>
    %41 = vector.multi_reduction <minimumf>, %40, %cst_29 [0] : vector<2x8x128xf32> to vector<8x128xf32>
    %42 = arith.minimumf %39, %41 : vector<8x128xf32>
    %c0_30 = arith.constant 0 : index
    %c0_31 = arith.constant 0 : index
    %43 = vector.load %arg10[%c0_30, %c0_31] : memref<8x128xf32, #tpu.memory_space<vmem>>, vector<8x128xf32>
    tpu.vector_store %arg10[%c0_30, %c0_31], %42 {strides = array<i32>} : memref<8x128xf32, #tpu.memory_space<vmem>>, vector<8x128xf32>,
    %c0_32 = arith.constant 0 : index
    %c0_33 = arith.constant 0 : index
    %44 = vector.load %arg11[%c0_32, %c0_33] : memref<8x128xf32, #tpu.memory_space<vmem>>, vector<8x128xf32>
    %45 = vector.shape_cast %1 : vector<16x128xf32> to vector<2x8x128xf32>
    %cst_34 = arith.constant dense<0xFF800000> : vector<8x128xf32>
    %46 = vector.multi_reduction <maximumf>, %45, %cst_34 [0] : vector<2x8x128xf32> to vector<8x128xf32>
    %47 = arith.maximumf %44, %46 : vector<8x128xf32>
    %c0_35 = arith.constant 0 : index
    %c0_36 = arith.constant 0 : index
    %48 = vector.load %arg11[%c0_35, %c0_36] : memref<8x128xf32, #tpu.memory_space<vmem>>, vector<8x128xf32>
    tpu.vector_store %arg11[%c0_35, %c0_36], %47 {strides = array<i32>} : memref<8x128xf32, #tpu.memory_space<vmem>>, vector<8x128xf32>,
    %c0_i32_37 = arith.constant 0 : i32
    %49 = arith.cmpi eq, %arg0, %c0_i32_37 : i32
    %50 = arith.extui %49 : i1 to i32
    %c0_i32_38 = arith.constant 0 : i32
    %51 = arith.cmpi ne, %50, %c0_i32_38 : i32
    scf.if %51 {
      %c0_39 = arith.constant 0 : index
      %c0_40 = arith.constant 0 : index
      %52 = vector.load %arg8[%c0_39, %c0_40] : memref<8x128xf32, #tpu.memory_space<vmem>>, vector<8x128xf32>
      %cst_41 = arith.constant dense<0x7F800000> : vector<8xf32>
      %53 = vector.multi_reduction <minimumf>, %52, %cst_41 [1] : vector<8x128xf32> to vector<8xf32>
      %54 = vector.shape_cast %53 : vector<8xf32> to vector<8x1xf32>
      %cst_42 = arith.constant dense<0x7F800000> : vector<1xf32>
      %55 = vector.multi_reduction <minimumf>, %54, %cst_42 [0] : vector<8x1xf32> to vector<1xf32>
      %56 = vector.shape_cast %55 : vector<1xf32> to vector<1x1xf32>
      %c0_43 = arith.constant 0 : index
      %c0_44 = arith.constant 0 : index
      %57 = vector.load %arg9[%c0_43, %c0_44] : memref<8x128xf32, #tpu.memory_space<vmem>>, vector<8x128xf32>
      %cst_45 = arith.constant dense<0xFF800000> : vector<8xf32>
      %58 = vector.multi_reduction <maximumf>, %57, %cst_45 [1] : vector<8x128xf32> to vector<8xf32>
      %59 = vector.shape_cast %58 : vector<8xf32> to vector<8x1xf32>
      %cst_46 = arith.constant dense<0xFF800000> : vector<1xf32>
      %60 = vector.multi_reduction <maximumf>, %59, %cst_46 [0] : vector<8x1xf32> to vector<1xf32>
      %61 = vector.shape_cast %60 : vector<1xf32> to vector<1x1xf32>
      %62 = arith.subf %61, %56 : vector<1x1xf32>
      %cst_47 = arith.constant 1.000000e+00 : f32
      %63 = vector.broadcast %cst_47 : f32 to vector<1x1xf32>
      %64 = arith.divf %63, %62 : vector<1x1xf32>
      %c0_48 = arith.constant 0 : index
      %c0_49 = arith.constant 0 : index
      %65 = vector.load %arg10[%c0_48, %c0_49] : memref<8x128xf32, #tpu.memory_space<vmem>>, vector<8x128xf32>
      %cst_50 = arith.constant dense<0x7F800000> : vector<8xf32>
      %66 = vector.multi_reduction <minimumf>, %65, %cst_50 [1] : vector<8x128xf32> to vector<8xf32>
      %67 = vector.shape_cast %66 : vector<8xf32> to vector<8x1xf32>
      %cst_51 = arith.constant dense<0x7F800000> : vector<1xf32>
      %68 = vector.multi_reduction <minimumf>, %67, %cst_51 [0] : vector<8x1xf32> to vector<1xf32>
      %69 = vector.shape_cast %68 : vector<1xf32> to vector<1x1xf32>
      %c0_52 = arith.constant 0 : index
      %c0_53 = arith.constant 0 : index
      %70 = vector.load %arg11[%c0_52, %c0_53] : memref<8x128xf32, #tpu.memory_space<vmem>>, vector<8x128xf32>
      %cst_54 = arith.constant dense<0xFF800000> : vector<8xf32>
      %71 = vector.multi_reduction <maximumf>, %70, %cst_54 [1] : vector<8x128xf32> to vector<8xf32>
      %72 = vector.shape_cast %71 : vector<8xf32> to vector<8x1xf32>
      %cst_55 = arith.constant dense<0xFF800000> : vector<1xf32>
      %73 = vector.multi_reduction <maximumf>, %72, %cst_55 [0] : vector<8x1xf32> to vector<1xf32>
      %74 = vector.shape_cast %73 : vector<1xf32> to vector<1x1xf32>
      %75 = arith.subf %74, %69 : vector<1x1xf32>
      %cst_56 = arith.constant 1.000000e+00 : f32
      %76 = vector.broadcast %cst_56 : f32 to vector<1x1xf32>
      %77 = arith.divf %76, %75 : vector<1x1xf32>
      %c0_57 = arith.constant 0 : index
      %c0_58 = arith.constant 0 : index
      %78 = vector.load %arg6[%c0_57, %c0_58] : memref<8x128xf32, #tpu.memory_space<vmem>>, vector<8x128xf32>
      %cst_59 = arith.constant dense<0.000000e+00> : vector<8xf32>
      %79 = vector.multi_reduction <add>, %78, %cst_59 [1] : vector<8x128xf32> to vector<8xf32>
      %80 = vector.shape_cast %79 : vector<8xf32> to vector<8x1xf32>
      %cst_60 = arith.constant dense<0.000000e+00> : vector<1xf32>
      %81 = vector.multi_reduction <add>, %80, %cst_60 [0] : vector<8x1xf32> to vector<1xf32>
      %82 = vector.shape_cast %81 : vector<1xf32> to vector<1x1xf32>
      %cst_61 = arith.constant 0.707106769 : f32
      %83 = vector.broadcast %cst_61 : f32 to vector<1x1xf32>
      %84 = arith.mulf %83, %82 : vector<1x1xf32>
      %c0_62 = arith.constant 0 : index
      %c0_63 = arith.constant 0 : index
      %85 = vector.load %arg7[%c0_62, %c0_63] : memref<8x128xf32, #tpu.memory_space<vmem>>, vector<8x128xf32>
      %cst_64 = arith.constant dense<0.000000e+00> : vector<8xf32>
      %86 = vector.multi_reduction <add>, %85, %cst_64 [1] : vector<8x128xf32> to vector<8xf32>
      %87 = vector.shape_cast %86 : vector<8xf32> to vector<8x1xf32>
      %cst_65 = arith.constant dense<0.000000e+00> : vector<1xf32>
      %88 = vector.multi_reduction <add>, %87, %cst_65 [0] : vector<8x1xf32> to vector<1xf32>
      %89 = vector.shape_cast %88 : vector<1xf32> to vector<1x1xf32>
      %cst_66 = arith.constant 0.707106769 : f32
      %90 = vector.broadcast %cst_66 : f32 to vector<1x1xf32>
      %91 = arith.mulf %90, %89 : vector<1x1xf32>
      %92 = arith.addf %84, %91 : vector<1x1xf32>
      %cst_67 = arith.constant 0.000000e+00 : f32
      %93 = vector.broadcast %cst_67 : f32 to vector<8x128xf32>
      %c0_i32_68 = arith.constant 0 : i32
      %c16_i32_69 = arith.constant 16 : i32
      %94 = arith.muli %c0_i32_68, %c16_i32_69 : i32
      %95 = tpu.assume_multiple %94, 8 : i32
      %96 = arith.index_cast %95 : i32 to index
      %c0_70 = arith.constant 0 : index
      %97 = vector.load %arg4[%96, %c0_70] : memref<16x128xf32, #tpu.memory_space<vmem>>, vector<16x128xf32>
      %98 = arith.index_cast %95 : i32 to index
      %c0_71 = arith.constant 0 : index
      %99 = vector.load %arg5[%98, %c0_71] : memref<16x128xf32, #tpu.memory_space<vmem>>, vector<16x128xf32>
      %100 = vector.broadcast %56 : vector<1x1xf32> to vector<16x128xf32>
      %101 = arith.subf %97, %100 : vector<16x128xf32>
      %102 = vector.broadcast %64 : vector<1x1xf32> to vector<16x128xf32>
      %103 = arith.mulf %101, %102 : vector<16x128xf32>
      %104 = vector.broadcast %69 : vector<1x1xf32> to vector<16x128xf32>
      %105 = arith.subf %99, %104 : vector<16x128xf32>
      %106 = vector.broadcast %77 : vector<1x1xf32> to vector<16x128xf32>
      %107 = arith.mulf %105, %106 : vector<16x128xf32>
      %108 = arith.mulf %103, %107 : vector<16x128xf32>
      %109 = arith.addf %103, %107 : vector<16x128xf32>
      %110 = arith.subf %109, %108 : vector<16x128xf32>
      %cst_72 = arith.constant 1.000000e-10 : f32
      %111 = vector.broadcast %cst_72 : f32 to vector<16x128xf32>
      %112 = arith.addf %110, %111 : vector<16x128xf32>
      %113 = tpu.reciprocal %112 {approx = true} : vector<16x128xf32> -> vector<16x128xf32>
      %114 = arith.mulf %108, %113 : vector<16x128xf32>
      %115 = vector.shape_cast %114 : vector<16x128xf32> to vector<2x8x128xf32>
      %cst_73 = arith.constant dense<0.000000e+00> : vector<8x128xf32>
      %116 = vector.multi_reduction <add>, %115, %cst_73 [0] : vector<2x8x128xf32> to vector<8x128xf32>
      %117 = arith.addf %93, %116 : vector<8x128xf32>
      %c1_i32 = arith.constant 1 : i32
      %cst_74 = arith.constant 2.048000e+03 : f32
      %118 = vector.broadcast %cst_74 : f32 to vector<1x1xf32>
      %119 = arith.divf %92, %118 : vector<1x1xf32>
      %cst_75 = arith.constant 0.000000e+00 : f32
      %120 = vector.broadcast %cst_75 : f32 to vector<1x1xf32>
      %121 = arith.subf %120, %119 : vector<1x1xf32>
      %cst_76 = arith.constant dense<0.000000e+00> : vector<8xf32>
      %122 = vector.multi_reduction <add>, %117, %cst_76 [1] : vector<8x128xf32> to vector<8xf32>
      %123 = vector.shape_cast %122 : vector<8xf32> to vector<8x1xf32>
      %cst_77 = arith.constant dense<0.000000e+00> : vector<1xf32>
      %124 = vector.multi_reduction <add>, %123, %cst_77 [0] : vector<8x1xf32> to vector<1xf32>
      %125 = vector.shape_cast %124 : vector<1xf32> to vector<1x1xf32>
      %cst_78 = arith.constant 2.048000e+03 : f32
      %126 = vector.broadcast %cst_78 : f32 to vector<1x1xf32>
      %127 = arith.divf %125, %126 : vector<1x1xf32>
      %cst_79 = arith.constant 1.000000e-10 : f32
      %128 = vector.broadcast %cst_79 : f32 to vector<1x1xf32>
      %129 = arith.addf %127, %128 : vector<1x1xf32>
      %130 = math.log %129 : vector<1x1xf32>
      %cst_80 = arith.constant 1.000000e+00 : f32
      %131 = vector.broadcast %cst_80 : f32 to vector<1x1xf32>
      %132 = arith.mulf %131, %130 : vector<1x1xf32>
      %133 = arith.subf %121, %132 : vector<1x1xf32>
      %c0_81 = arith.constant 0 : index
      %c0_82 = arith.constant 0 : index
      %134 = vector.load %arg3[%c0_81, %c0_82] : memref<1x1xf32, #tpu.memory_space<vmem>>, vector<1x1xf32>
      tpu.vector_store %arg3[%c0_81, %c0_82], %133 {strides = array<i32>} : memref<1x1xf32, #tpu.memory_space<vmem>>, vector<1x1xf32>,
    } else {
    }
    return
  }
  func.func @transform_0(%arg0: i32) -> (i32, i32) {
    %c0_i32 = arith.constant 0 : i32
    %c0_i32_0 = arith.constant 0 : i32
    return %arg0, %c0_i32 : i32, i32
  }
  func.func @transform_1(%arg0: i32) -> (i32, i32) {
    %c0_i32 = arith.constant 0 : i32
    %c0_i32_0 = arith.constant 0 : i32
    return %arg0, %c0_i32 : i32, i32
  }
  func.func @transform_2(%arg0: i32) -> (i32, i32) {
    %c0_i32 = arith.constant 0 : i32
    %c0_i32_0 = arith.constant 0 : i32
    %c0_i32_1 = arith.constant 0 : i32
    return %c0_i32, %c0_i32_0 : i32, i32
  }
}

</mosaic_0001>

<bundles_post_ra>
// kernel: ternaus_loss.1
= control target key start
LH: loop header
LB: loop body
LE: loop exit
PB: predicated region body
PF: predicated region fallthrough
CT: control target
= control target key end

     0   :  { %s339_s0 = inlined_call_operand.vmem [shape: f32[16,128], index: 0, kind: input, shape index: {}]   ;;  %s340_s1 = inlined_call_operand.vmem [shape: f32[16,128], index: 1, kind: input, shape index: {}]   ;;  %s341_s2 = inlined_call_operand.hbm [shape: f32[1,1], index: 2, kind: output, shape index: {}]  }
   0x1   :  { %v299_v0 = vld [vmem:[%s340_s1] sm:$0xff]  ;;  %v304_v1 = vld [vmem:[%s340_s1 + $0x8] sm:$0xff] }
   0x2   :  { %v309_v2 = vld [vmem:[%s339_s0] sm:$0xff]  ;;  %v66_v3 = vmin.f32 %v299_v0, %v304_v1  ;;  %v316_v4 = vld [vmem:[%s339_s0 + $0x8] sm:$0xff] }
   0x3   :  { %7 = vsyncpa [#allocation11], 0  ;;  %v58_v5 = vmin.f32 %v309_v2, %v316_v4  ;;  %v70_v6 = vmax.f32 %v299_v0, %v304_v1  ;;  %v62_v7 = vmax.f32 %v309_v2, %v316_v4  ;;  %v46_v30 = vsub.f32 1.0, %v309_v2  ;;  %s280_s0 = smov [#allocation10]   ;;  %s222_s19 = sshll.u32 %s341_s2, 4  ;;  %s223_s19 = int_to_ptr.hbm [resolvable:$true] %s222_s19 }
   0x4   :  { %111 = vmin.xlane.f32.xlu1 %v66_v3  ;;  %v47_v31 = vsub.f32 1.0, %v316_v4  ;;  %v44_v42 = vsub.f32 1.0, %v299_v0  ;;  %v45_v43 = vsub.f32 1.0, %v304_v1  ;;  %s220_s1 = sshll.u32 %s280_s0, 4  ;;  %vm213_vm9 = vcmask 0   ;;  %s221_s1 = int_to_ptr.vmem [resolvable:$true] %s220_s1 }
   0x5   :  { %77 = vmin.xlane.f32.xlu0 %v58_v5  ;;  %233 = vlog2.f32 %v46_v30 }
   0x6   :  { %235 = vlog2.f32 %v47_v31 }
   0xb   :  { %v234_v40 = vpop.eup %233 }
   0xc   :  { %120 = vmax.xlane.f32.xlu1 %v70_v6  ;;  %v236_v41 = vpop.eup %235  ;;  %v49_v44 = vmul.f32 0.6931472, %v234_v40 }
   0xd   :  { %86 = vmax.xlane.f32.xlu0 %v62_v7  ;;  %v51_v45 = vmul.f32 0.6931472, %v236_v41 }
   0xe   :  { %v52_v46 = vmul.f32 %v49_v44, %v44_v42 }
   0xf   :  { %v53_v47 = vmul.f32 %v51_v45, %v45_v43 }
  0x11   :  { %v54_v51 = vadd.f32 %v53_v47, %v52_v46 }
  0x15   :  { %155 = vadd.xlane.f32.xlu0 %v54_v51 }
  0x77   :  { %v112_v8 = vpop.xlane.xlu1 %111 }
  0x78   :  { %v113_v9 = vrot.slane %v112_v8, 4  ;;  %v78_v10 = vpop.xlane.xlu0 %77 }
  0x79   :  { %v79_v11 = vrot.slane %v78_v10, 4 }
  0x7a   :  { %v114_v12 = vmin.f32 %v112_v8, %v113_v9 }
  0x7b   :  { %v80_v13 = vmin.f32 %v78_v10, %v79_v11 }
  0x7c   :  { %v115_v14 = vrot.slane %v114_v12, 2 }
  0x7d   :  { %v81_v15 = vrot.slane %v80_v13, 2 }
  0x7e   :  { %v116_v20 = vmin.f32 %v114_v12, %v115_v14 }
  0x7f   :  { %v121_v16 = vpop.xlane.xlu1 %120  ;;  %v82_v22 = vmin.f32 %v80_v13, %v81_v15 }
  0x80   :  { %v122_v17 = vrot.slane %v121_v16, 4  ;;  %v87_v18 = vpop.xlane.xlu0 %86  ;;  %v117_v26 = vrot.slane %v116_v20, 1 }
  0x81   :  { %v88_v19 = vrot.slane %v87_v18, 4  ;;  %v83_v28 = vrot.slane %v82_v22, 1 }
  0x82   :  { %v123_v21 = vmax.f32 %v121_v16, %v122_v17  ;;  %v118_v34 = vmin.f32 %v116_v20, %v117_v26 }
  0x83   :  { %v89_v23 = vmax.f32 %v87_v18, %v88_v19  ;;  %v84_v36 = vmin.f32 %v82_v22, %v83_v28 }
  0x84   :  { %v124_v24 = vrot.slane %v123_v21, 2  ;;  %v173_v62 = vsub.f32 %v299_v0, %v118_v34  ;;  %v174_v5 = vsub.f32 %v304_v1, %v118_v34 }
  0x85   :  { %v90_v25 = vrot.slane %v89_v23, 2  ;;  %v169_v8 = vsub.f32 %v309_v2, %v84_v36  ;;  %v170_v11 = vsub.f32 %v316_v4, %v84_v36 }
  0x86   :  { %v125_v27 = vmax.f32 %v123_v21, %v124_v24 }
  0x87   :  { %v91_v29 = vmax.f32 %v89_v23, %v90_v25 }
  0x88   :  { %v126_v32 = vrot.slane %v125_v27, 1 }
  0x89   :  { %v92_v33 = vrot.slane %v91_v29, 1 }
  0x8a   :  { %v127_v35 = vmax.f32 %v125_v27, %v126_v32 }
  0x8b   :  { %v93_v37 = vmax.f32 %v91_v29, %v92_v33 }
  0x8c   :  { %v128_v38 = vsub.f32 %v127_v35, %v118_v34 }
  0x8d   :  { %v94_v39 = vsub.f32 %v93_v37, %v84_v36 }
  0x8e   :  { %237 = vrcp.f32 %v128_v38  ;;  %v140_v55 = vand.u32 2147483648, %v128_v38  ;;  %v138_v58 = vand.u32 2147483647, %v128_v38  ;;  %vm134_vm2 = vweird.f32 %v128_v38 }
  0x8f   :  { %239 = vrcp.f32 %v94_v39  ;;  %v106_v56 = vand.u32 2147483648, %v94_v39  ;;  %v104_v60 = vand.u32 2147483647, %v94_v39  ;;  %vm100_vm3 = vweird.f32 %v94_v39 }
  0x90   :  { %v141_v3 = vor.u32 1.1754944e-38, %v140_v55  ;;  %vm139_vm6 = vcmp.eq.f32.partialorder %v138_v58, 8.507059e+37  ;;  %241 = vlog2.f32 %v309_v2  ;;  %v279_v2 = vmov 2048.0  }
  0x91   :  { %v107_v6 = vor.u32 1.1754944e-38, %v106_v56  ;;  %vm105_vm7 = vcmp.eq.f32.partialorder %v104_v60, 8.507059e+37  ;;  %243 = vlog2.f32 %v316_v4 }
  0x94   :  { %v238_v48 = vpop.eup %237 }
  0x95   :  { %v240_v49 = vpop.eup %239  ;;  %v130_v50 = vmul.f32 %v238_v48, %v128_v38  ;;  %vm135_vm0 = vweird.f32 %v238_v48  ;;  %v156_v38 = vpop.xlane.xlu0 %155 }
  0x96   :  { %v96_v52 = vmul.f32 %v240_v49, %v94_v39  ;;  %vm101_vm1 = vweird.f32 %v240_v49  ;;  %vm136_vm4 = vmor %vm134_vm2, %vm135_vm0  ;;  %v242_v25 = vpop.eup %241  ;;  %v157_v39 = vrot.slane %v156_v38, 4 }
  0x97   :  { %v131_v53 = vsub.f32 1.0, %v130_v50  ;;  %vm102_vm5 = vmor %vm100_vm3, %vm101_vm1  ;;  %v244_v26 = vpop.eup %243  ;;  %v35_v31 = vmul.f32 0.6931472, %v242_v25 }
  0x98   :  { %v97_v54 = vsub.f32 1.0, %v96_v52  ;;  %v37_v32 = vmul.f32 0.6931472, %v244_v26  ;;  %v158_v43 = vadd.f32 %v157_v39, %v156_v38 }
  0x99   :  { %v132_v57 = vmul.f32 %v238_v48, %v131_v53  ;;  %v38_v34 = vmul.f32 %v35_v31, %v299_v0 }
  0x9a   :  { %v98_v59 = vmul.f32 %v240_v49, %v97_v54  ;;  %v39_v35 = vmul.f32 %v37_v32, %v304_v1  ;;  %v159_v47 = vrot.slane %v158_v43, 2 }
  0x9b   :  { %v133_v61 = vadd.f32 %v238_v48, %v132_v57 }
  0x9c   :  { %v99_v63 = vadd.f32 %v240_v49, %v98_v59  ;;  %v40_v36 = vadd.f32 %v39_v35, %v38_v34  ;;  %v160_v50 = vadd.f32 %v159_v47, %v158_v43 }
  0x9d   :  { %v137_v7 = vsel %vm136_vm4, %v238_v48, %v133_v61 }
  0x9e   :  { %v103_v9 = vsel %vm102_vm5, %v240_v49, %v99_v63  ;;  %v142_v10 = vsel %vm139_vm6, %v141_v3, %v137_v7  ;;  %v161_v56 = vrot.slane %v160_v50, 1 }
  0x9f   :  { %v108_v12 = vsel %vm105_vm7, %v107_v6, %v103_v9  ;;  %v175_v13 = vmul.f32 %v173_v62, %v142_v10  ;;  %v176_v14 = vmul.f32 %v174_v5, %v142_v10 }
  0xa0   :  { %v171_v15 = vmul.f32 %v169_v8, %v108_v12  ;;  %v172_v16 = vmul.f32 %v170_v11, %v108_v12  ;;  %v162_v60 = vadd.f32 %v161_v56, %v160_v50 }
  0xa2   :  { %v177_v17 = vmul.f32 %v175_v13, %v171_v15  ;;  %v178_v18 = vmul.f32 %v176_v14, %v172_v16  ;;  %v179_v19 = vadd.f32 %v175_v13, %v171_v15  ;;  %v180_v20 = vadd.f32 %v176_v14, %v172_v16 }
  0xa3   :  { %v163_v63 = vmul.f32 0.70710677, %v162_v60 }
  0xa4   :  { %v181_v21 = vsub.f32 %v179_v19, %v177_v17  ;;  %v182_v22 = vsub.f32 %v180_v20, %v178_v18 }
  0xa6   :  { %v183_v23 = vadd.f32 1e-10, %v181_v21  ;;  %v184_v24 = vadd.f32 1e-10, %v182_v22 }
  0xa8   :  { %245 = vrcp.f32 %v183_v23 }
  0xa9   :  { %247 = vrcp.f32 %v184_v24 }
  0xaa   :  { %249 = vrcp.f32 %v279_v2 }
  0xae   :  { %v246_v27 = vpop.eup %245 }
  0xaf   :  { %v248_v28 = vpop.eup %247  ;;  %v187_v29 = vmul.f32 %v246_v27, %v177_v17 }
  0xb0   :  { %v188_v30 = vmul.f32 %v248_v28, %v178_v18  ;;  %v250_v4 = vpop.eup %249 }
  0xb1   :  { %v192_v37 = vmul.f32 2048.0, %v250_v4  ;;  %vm196_vm8 = vweird.f32 %v250_v4 }
  0xb2   :  { %v189_v33 = vadd.f32 %v188_v30, %v187_v29 }
  0xb3   :  { %v193_v40 = vsub.f32 1.0, %v192_v37 }
  0xb4   :  { %200 = vadd.xlane.f32.xlu2 %v189_v33 }
  0xb5   :  { %v194_v44 = vmul.f32 %v250_v4, %v193_v40 }
  0xb7   :  { %v195_v48 = vadd.f32 %v250_v4, %v194_v44 }
  0xb9   :  { %v197_v52 = vsel %vm196_vm8, %v250_v4, %v195_v48 }
  0xbc   :  { %145 = vadd.xlane.f32.xlu2 %v40_v36 }
 0x127   :  { %v201_v41 = vpop.xlane.xlu2 %200 }
 0x128   :  { %v202_v42 = vrot.slane %v201_v41, 4 }
 0x12a   :  { %v203_v45 = vadd.f32 %v202_v42, %v201_v41 }
 0x12c   :  { %v204_v46 = vrot.slane %v203_v45, 2 }
 0x12e   :  { %v205_v0 = vadd.f32 %v204_v46, %v203_v45 }
 0x12f   :  { %v146_v1 = vpop.xlane.xlu2 %145 }
 0x130   :  { %v206_v49 = vrot.slane %v205_v0, 1  ;;  %v147_v51 = vrot.slane %v146_v1, 4 }
 0x132   :  { %v207_v53 = vadd.f32 %v206_v49, %v205_v0  ;;  %v148_v54 = vadd.f32 %v147_v51, %v146_v1 }
 0x134   :  { %v208_v55 = vmul.f32 %v207_v53, %v197_v52  ;;  %v149_v57 = vrot.slane %v148_v54, 2 }
 0x136   :  { %v209_v58 = vadd.f32 1e-10, %v208_v55  ;;  %v150_v59 = vadd.f32 %v149_v57, %v148_v54 }
 0x138   :  { %v151_v61 = vrot.slane %v150_v59, 1  ;;  %251 = vlog2.f32 %v209_v58 }
 0x13a   :  { %v152_v62 = vadd.f32 %v151_v61, %v150_v59 }
 0x13c   :  { %v153_v3 = vmul.f32 0.70710677, %v152_v62 }
 0x13e   :  { %v164_v5 = vadd.f32 %v163_v63, %v153_v3  ;;  %v252_v6 = vpop.eup %251 }
 0x13f   :  { %v211_v9 = vmul.f32 0.6931472, %v252_v6 }
 0x140   :  { %v198_v7 = vmul.f32 %v197_v52, %v164_v5 }
 0x142   :  { %v199_v8 = vsub.f32 0.0, %v198_v7 }
 0x144   :  { %v212_v10 = vsub.f32 %v199_v8, %v211_v9 }
 0x146   :  { %214 = vst.msk [vmem:[#allocation10] sm:$0x1] %vm213_vm9, %v212_v10 }
 0x147   :  { %225 = dma.vmem_to_hbm [thread:$0]  %s221_s1, 16, %s223_s19, [#allocation11]  }
 0x148   :  { %277 = dma.done.wait [#allocation11], 16  }
 0x149   :  { %278 = vsyncadd [#allocation11], 4294967280 }
 0x14a   :  { %230 = vsyncpa [#allocation11], 1 }

</bundles_post_ra>
